<compile_context>
chip_gen: v5e
topology: v5e:2x2
jax: 0.10.0
libtpu: 0.0.40
codegen_flags: <defaults>
</compile_context>

<pallas_src>
import functools

import jax
import jax.numpy as jnp
import numpy as np
from jax.experimental import pallas as pl
from jax.experimental.pallas import tpu as pltpu

_LANES = 128
_OUT_SUBLANES = 8


def _round_up(x, m):
    return ((x + m - 1) // m) * m


def _default_num_parallel():
    """2 on dual-TensorCore chips (v4 / v5p / v7x), else 1 (v5e / v6e)."""
    try:
        kind = jax.devices()[0].device_kind.lower()
    except Exception:
        return 1
    if "lite" in kind or "v5e" in kind or "v6" in kind:
        return 1
    if "v4" in kind or "v5p" in kind or "v7" in kind or "7x" in kind:
        return 2
    return 1


def _laplacian_loss_kernel(outputs_ref, targets_ref, out_ref, acc_ref, *,
                           n_rows, n_dims, steps, block_rows, approx_reciprocal):
    p = pl.program_id(0)
    k = pl.program_id(1)

    @pl.when(k == 0)
    def _():
        acc_ref[...] = jnp.zeros_like(acc_ref)

    # Load raw blocks and upcast in-register (bf16 ingestion stays bf16 in HBM).
    blk = outputs_ref[...].astype(jnp.float32)        # (block_rows, 2*n_dims)
    xx = targets_ref[...].astype(jnp.float32)         # (block_rows, n_dims)
    mu = blk[:, :n_dims]
    si = blk[:, n_dims:]

    if approx_reciprocal:
        norm = 1.0 - mu * pl.reciprocal(xx, approx=True)   # single EUP push
    else:
        norm = 1.0 - mu / xx                                # exact, matches reference
    values = jnp.abs(norm) * jnp.exp(-si) + si

    # Tail / redundant-block mask (no host-side padding): rows >= n_rows -> 0.
    # A select, not a multiply, so inf/nan from garbage rows cannot leak in.
    row_start = (p * steps + k) * block_rows
    row_ids = row_start + jax.lax.broadcasted_iota(jnp.int32, (block_rows, 1), 0)
    values = jnp.where(row_ids < n_rows, values, 0.0)

    # Fold the block into the small (8, n_dims) accumulator with VPU adds only
    # (no cross-lane/sublane work, no full-block accumulator load/store).
    acc_ref[...] += jnp.sum(values.reshape(block_rows // 8, 8, n_dims), axis=0)

    @pl.when(k == pl.num_programs(1) - 1)
    def _():
        # One cross-lane/sublane reduction per core; broadcast the partial sum
        # into this core's (8, 128) output block (wrapper reads element [0, 0]).
        out_ref[...] = jnp.zeros_like(out_ref) + jnp.sum(acc_ref[...])


def laplacian_loss(outputs, targets, *, max_block_rows=2048, num_parallel=None,
                   approx_reciprocal=False, vmem_budget_bytes=8 * 1024 * 1024):
    """outputs: (N, 2*D), targets: (N, D) -> scalar f32 mean Laplacian loss."""
    n, two_d = outputs.shape
    assert two_d % 2 == 0, f"feature dim must be even (mu|si), got {two_d}"
    d = two_d // 2
    assert targets.shape == (n, d), (targets.shape, (n, d))

    if num_parallel is None:
        num_parallel = _default_num_parallel()

    out_item = jnp.dtype(outputs.dtype).itemsize
    tgt_item = jnp.dtype(targets.dtype).itemsize
    # Sublane-packing alignment: 8 rows for 32-bit, 16 for 16-bit, 32 for 8-bit.
    row_align = 8 * max(1, 4 // min(out_item, tgt_item))

    # Row-block size: as big as useful, budgeted against VMEM (double-buffered
    # inputs, lane dim padded to 128 in VMEM), aligned, and no bigger than one
    # core's share of the rows (avoids useless padding for small problems).
    lanes_out = _round_up(two_d, _LANES)
    lanes_tgt = _round_up(d, _LANES)
    bytes_per_row = 2 * (lanes_out * out_item + lanes_tgt * tgt_item)
    rows_by_vmem = max(row_align,
                       (vmem_budget_bytes // bytes_per_row) // row_align * row_align)
    max_block_rows = max(row_align, (max_block_rows // row_align) * row_align)
    rows_per_core = _round_up(pl.cdiv(n, num_parallel), row_align)
    block_rows = min(max_block_rows, rows_by_vmem, rows_per_core)

    total_blocks = pl.cdiv(n, block_rows)
    num_parallel = min(num_parallel, total_blocks)
    steps = pl.cdiv(total_blocks, num_parallel)

    def row_block(p, k):
        # Contiguous per-core block ranges; clamp so a core's trailing
        # (redundant) steps re-read the last valid block -- their rows are
        # fully masked out in the kernel, so they contribute exactly 0.
        return (jnp.minimum(p * steps + k, total_blocks - 1), 0)

    count = n * d
    cost = pl.CostEstimate(
        flops=6 * count,
        transcendentals=count,
        bytes_accessed=(outputs.size * out_item + targets.size * tgt_item
                        + num_parallel * _OUT_SUBLANES * _LANES * 4),
    )

    kernel = functools.partial(
        _laplacian_loss_kernel,
        n_rows=n, n_dims=d, steps=steps, block_rows=block_rows,
        approx_reciprocal=approx_reciprocal,
    )

    partials = pl.pallas_call(
        kernel,
        out_shape=jax.ShapeDtypeStruct(
            (num_parallel * _OUT_SUBLANES, _LANES), jnp.float32),
        grid_spec=pltpu.PrefetchScalarGridSpec(
            num_scalar_prefetch=0,
            grid=(num_parallel, steps),
            in_specs=[
                pl.BlockSpec((block_rows, two_d), row_block),   # outputs as-is
                pl.BlockSpec((block_rows, d), row_block),       # targets as-is
            ],
            out_specs=pl.BlockSpec((_OUT_SUBLANES, _LANES), lambda p, k: (p, 0)),
            scratch_shapes=[pltpu.VMEM((_OUT_SUBLANES, d), jnp.float32)],
        ),
        compiler_params=pltpu.CompilerParams(
            # TODO(synk): on v7x, if plain "parallel" does not shard the leading
            # axis across the two TensorCores, switch it to pltpu.CORE_PARALLEL.
            dimension_semantics=("parallel", "arbitrary"),
        ),
        cost_estimate=cost,
    )(outputs, targets)

    per_core = partials[::_OUT_SUBLANES, 0]           # one partial sum per core slice
    return jnp.sum(per_core) / jnp.float32(count)     # size_average=True -> mean


def _reference(outputs, targets):
    d = outputs.shape[1] // 2
    mu, si = outputs[:, :d], outputs[:, d:]
    norm = 1.0 - mu / targets
    values = jnp.abs(norm) * jnp.exp(-si) + si
    return jnp.mean(values.astype(jnp.float32))


if __name__ == "__main__":
    key = jax.random.PRNGKey(0)
    k1, k2, k3, k4 = jax.random.split(key, 4)

    # Case 1: aligned small shapes. outputs: (N, 2*D), targets: (N, D).
    N, D = 64, 16
    outputs = jax.random.normal(k1, (N, 2 * D), dtype=jnp.float32)
    # targets are ground-truth distances; keep them away from zero.
    targets = jax.random.uniform(k2, (N, D), dtype=jnp.float32, minval=0.5, maxval=3.0)
    loss = laplacian_loss(outputs, targets)
    jax.block_until_ready(loss)
    ref = _reference(outputs, targets)
    assert np.allclose(np.asarray(loss), np.asarray(ref), rtol=1e-5, atol=1e-5), (loss, ref)

    # Case 2: ragged row count (exercises the in-kernel tail mask; no host padding).
    N2, D2 = 50, 16
    outputs2 = jax.random.normal(k3, (N2, 2 * D2), dtype=jnp.float32)
    targets2 = jax.random.uniform(k4, (N2, D2), dtype=jnp.float32, minval=0.5, maxval=3.0)
    loss2 = laplacian_loss(outputs2, targets2)
    jax.block_until_ready(loss2)
    ref2 = _reference(outputs2, targets2)
    assert np.allclose(np.asarray(loss2), np.asarray(ref2), rtol=1e-5, atol=1e-5), (loss2, ref2)

    # Case 3: force a 2-way core split with tiny blocks (exercises clamped
    # redundant blocks on the shorter core slice + partial last block).
    loss3 = laplacian_loss(outputs2, targets2, num_parallel=2, max_block_rows=8)
    jax.block_until_ready(loss3)
    assert np.allclose(np.asarray(loss3), np.asarray(ref2), rtol=1e-5, atol=1e-5), (loss3, ref2)

    print("KERNEL_OK")
</pallas_src>

<mosaic_0001>
module attributes {stable_mosaic.version = 11 : i64} {
  func.func @_laplacian_loss_kernel(%arg0: i32, %arg1: i32, %arg2: memref<64x32xf32, #tpu.memory_space<vmem>>, %arg3: memref<64x16xf32, #tpu.memory_space<vmem>>, %arg4: memref<8x128xf32, #tpu.memory_space<vmem>>, %arg5: memref<8x16xf32, #tpu.memory_space<vmem>>) attributes {dimension_semantics = [#tpu.dimension_semantics<parallel>, #tpu.dimension_semantics<arbitrary>], iteration_bounds = array<i64: 1, 1>, scalar_prefetch = 0 : i64, scratch_operands = 1 : i64, tpu.core_type = #tpu.core_type<tc>, window_params = [{transform_indices = @transform_0, window_bounds = array<i64: 64, 32>}, {transform_indices = @transform_1, window_bounds = array<i64: 64, 16>}, {transform_indices = @transform_2, window_bounds = array<i64: 8, 128>}]} {
    %c0_i32 = arith.constant 0 : i32
    %0 = arith.cmpi eq, %arg1, %c0_i32 : i32
    %1 = arith.extui %0 : i1 to i32
    %c0_i32_0 = arith.constant 0 : i32
    %2 = arith.cmpi ne, %1, %c0_i32_0 : i32
    scf.if %2 {
      %cst_14 = arith.constant 0.000000e+00 : f32
      %36 = vector.broadcast %cst_14 : f32 to vector<8x16xf32>
      %c0_15 = arith.constant 0 : index
      %c0_16 = arith.constant 0 : index
      %37 = vector.load %arg5[%c0_15, %c0_16] : memref<8x16xf32, #tpu.memory_space<vmem>>, vector<8x16xf32>
      tpu.vector_store %arg5[%c0_15, %c0_16], %36 {strides = array<i32>} : memref<8x16xf32, #tpu.memory_space<vmem>>, vector<8x16xf32>,
    } else {
    }
    %c0 = arith.constant 0 : index
    %c0_1 = arith.constant 0 : index
    %3 = vector.load %arg2[%c0, %c0_1] : memref<64x32xf32, #tpu.memory_space<vmem>>, vector<64x32xf32>
    %c0_2 = arith.constant 0 : index
    %c0_3 = arith.constant 0 : index
    %4 = vector.load %arg3[%c0_2, %c0_3] : memref<64x16xf32, #tpu.memory_space<vmem>>, vector<64x16xf32>
    %5 = vector.extract_strided_slice %3 {offsets = [0, 0], sizes = [64, 16], strides = [1, 1]} : vector<64x32xf32> to vector<64x16xf32>
    %6 = vector.extract_strided_slice %3 {offsets = [0, 16], sizes = [64, 16], strides = [1, 1]} : vector<64x32xf32> to vector<64x16xf32>
    %7 = arith.divf %5, %4 : vector<64x16xf32>
    %cst = arith.constant 1.000000e+00 : f32
    %8 = vector.broadcast %cst : f32 to vector<64x16xf32>
    %9 = arith.subf %8, %7 : vector<64x16xf32>
    %10 = math.absf %9 : vector<64x16xf32>
    %cst_4 = arith.constant 0.000000e+00 : f32
    %11 = vector.broadcast %cst_4 : f32 to vector<64x16xf32>
    %12 = arith.subf %11, %6 : vector<64x16xf32>
    %13 = math.exp %12 : vector<64x16xf32>
    %14 = arith.mulf %10, %13 : vector<64x16xf32>
    %15 = arith.addf %14, %6 : vector<64x16xf32>
    %c1_i32 = arith.constant 1 : i32
    %16 = arith.muli %arg0, %c1_i32 : i32
    %17 = arith.addi %16, %arg1 : i32
    %c64_i32 = arith.constant 64 : i32
    %18 = arith.muli %17, %c64_i32 : i32
    %19 = tpu.iota {dimensions = array<i32: 0>} : vector<64x1xi32>
    %20 = vector.broadcast %18 : i32 to vector<64x1xi32>
    %21 = arith.addi %20, %19 : vector<64x1xi32>
    %c64_i32_5 = arith.constant 64 : i32
    %22 = vector.broadcast %c64_i32_5 : i32 to vector<64x1xi32>
    %23 = arith.cmpi slt, %21, %22 : vector<64x1xi32>
    %cst_6 = arith.constant 0.000000e+00 : f32
    %24 = vector.shape_cast %23 : vector<64x1xi1> to vector<64x1xi1>
    %25 = vector.broadcast %24 : vector<64x1xi1> to vector<64x16xi1>
    %26 = vector.broadcast %cst_6 : f32 to vector<64x16xf32>
    %27 = arith.select %25, %15, %26 : vector<64x16xi1>, vector<64x16xf32>
    %c0_7 = arith.constant 0 : index
    %c0_8 = arith.constant 0 : index
    %28 = vector.load %arg5[%c0_7, %c0_8] : memref<8x16xf32, #tpu.memory_space<vmem>>, vector<8x16xf32>
    %29 = vector.shape_cast %27 : vector<64x16xf32> to vector<8x8x16xf32>
    %cst_9 = arith.constant dense<0.000000e+00> : vector<8x16xf32>
    %30 = vector.multi_reduction <add>, %29, %cst_9 [0] : vector<8x8x16xf32> to vector<8x16xf32>
    %31 = arith.addf %28, %30 : vector<8x16xf32>
    %c0_10 = arith.constant 0 : index
    %c0_11 = arith.constant 0 : index
    %32 = vector.load %arg5[%c0_10, %c0_11] : memref<8x16xf32, #tpu.memory_space<vmem>>, vector<8x16xf32>
    tpu.vector_store %arg5[%c0_10, %c0_11], %31 {strides = array<i32>} : memref<8x16xf32, #tpu.memory_space<vmem>>, vector<8x16xf32>,
    %c0_i32_12 = arith.constant 0 : i32
    %33 = arith.cmpi eq, %arg1, %c0_i32_12 : i32
    %34 = arith.extui %33 : i1 to i32
    %c0_i32_13 = arith.constant 0 : i32
    %35 = arith.cmpi ne, %34, %c0_i32_13 : i32
    scf.if %35 {
      %cst_14 = arith.constant 0.000000e+00 : f32
      %36 = vector.broadcast %cst_14 : f32 to vector<8x128xf32>
      %c0_15 = arith.constant 0 : index
      %c0_16 = arith.constant 0 : index
      %37 = vector.load %arg5[%c0_15, %c0_16] : memref<8x16xf32, #tpu.memory_space<vmem>>, vector<8x16xf32>
      %38 = vector.shape_cast %37 : vector<8x16xf32> to vector<1x8x16xf32>
      %cst_17 = arith.constant dense<0.000000e+00> : vector<1xf32>
      %39 = vector.multi_reduction <add>, %38, %cst_17 [1, 2] : vector<1x8x16xf32> to vector<1xf32>
      %40 = vector.shape_cast %39 : vector<1xf32> to vector<1x1x1xf32>
      %41 = vector.extract %40[0, 0, 0] : f32 from vector<1x1x1xf32>
      %42 = vector.broadcast %41 : f32 to vector<8x128xf32>
      %43 = arith.addf %36, %42 : vector<8x128xf32>
      %c0_18 = arith.constant 0 : index
      %c0_19 = arith.constant 0 : index
      %44 = vector.load %arg4[%c0_18, %c0_19] : memref<8x128xf32, #tpu.memory_space<vmem>>, vector<8x128xf32>
      tpu.vector_store %arg4[%c0_18, %c0_19], %43 {strides = array<i32>} : memref<8x128xf32, #tpu.memory_space<vmem>>, vector<8x128xf32>,
    } else {
    }
    return
  }
  func.func @transform_0(%arg0: i32, %arg1: i32) -> (i32, i32) {
    %c1_i32 = arith.constant 1 : i32
    %0 = arith.muli %arg0, %c1_i32 : i32
    %1 = arith.addi %0, %arg1 : i32
    %c0_i32 = arith.constant 0 : i32
    %2 = arith.minsi %1, %c0_i32 : i32
    %c0_i32_0 = arith.constant 0 : i32
    %c0_i32_1 = arith.constant 0 : i32
    return %2, %c0_i32_0 : i32, i32
  }
  func.func @transform_1(%arg0: i32, %arg1: i32) -> (i32, i32) {
    %c1_i32 = arith.constant 1 : i32
    %0 = arith.muli %arg0, %c1_i32 : i32
    %1 = arith.addi %0, %arg1 : i32
    %c0_i32 = arith.constant 0 : i32
    %2 = arith.minsi %1, %c0_i32 : i32
    %c0_i32_0 = arith.constant 0 : i32
    %c0_i32_1 = arith.constant 0 : i32
    return %2, %c0_i32_0 : i32, i32
  }
  func.func @transform_2(%arg0: i32, %arg1: i32) -> (i32, i32) {
    %c0_i32 = arith.constant 0 : i32
    %c0_i32_0 = arith.constant 0 : i32
    return %arg0, %c0_i32 : i32, i32
  }
}

</mosaic_0001>

<bundles_post_ra>
// kernel: tpu_custom_call.1
= control target key start
LH: loop header
LB: loop body
LE: loop exit
PB: predicated region body
PF: predicated region fallthrough
CT: control target
= control target key end

     0   :  { %s517_s15 = smov 112   ;;  %s812_s0 = inlined_call_operand.vmem [shape: f32[64,32], index: 0, kind: input, shape index: {}]   ;;  %s813_s1 = inlined_call_operand.vmem [shape: f32[64,16], index: 1, kind: input, shape index: {}]   ;;  %s814_s2 = inlined_call_operand.hbm [shape: f32[8,128], index: 2, kind: output, shape index: {}]  }
   0x1   :  { %v538_v0 = vld [vmem:[%s812_s0] sm:$0xff]  ;;  %v543_v1 = vld [vmem:[%s812_s0 + $0x10] sm:$0xff]  ;;  %v548_v2 = vld [vmem:[%s812_s0 + $0x8] sm:$0xff] }
   0x2   :  { %306 = vrot.lane.b32.xlu1 %v538_v0, %s517_s15  ;;  %v234_v3 = vsub.f32 0.0, %v538_v0  ;;  %v236_v4 = vsub.f32 0.0, %v543_v1  ;;  %v557_v5 = vld [vmem:[%s812_s0 + $0x20] sm:$0xff]  ;;  %308 = vrot.lane.b32.xlu2 %v548_v2, %s517_s15  ;;  %v564_v6 = vld [vmem:[%s812_s0 + $0x18] sm:$0xff] }
   0x3   :  { %7 = vsyncpa [#allocation4], 0  ;;  %v235_v9 = vsub.f32 0.0, %v548_v2  ;;  %v238_v10 = vsub.f32 0.0, %v557_v5  ;;  %v237_v11 = vsub.f32 0.0, %v564_v6  ;;  %v574_v18 = vld [vmem:[%s812_s0 + $0x28] sm:$0xff] }
   0x4   :  { %v242_v7 = vmul.f32 1.442695, %v234_v3  ;;  %v246_v8 = vmul.f32 1.442695, %v236_v4  ;;  %v579_v19 = vld [vmem:[%s812_s0 + $0x30] sm:$0xff]  ;;  %v585_v21 = vld [vmem:[%s812_s0 + $0x38] sm:$0xff] }
   0x5   :  { %v248_v12 = vmul.f32 1.442695, %v237_v11  ;;  %v244_v13 = vmul.f32 1.442695, %v235_v9  ;;  %v250_v14 = vmul.f32 1.442695, %v238_v10 }
   0x6   :  { %459 = vpow2.f32 %v242_v7  ;;  %v240_v22 = vsub.f32 0.0, %v579_v19  ;;  %v239_v24 = vsub.f32 0.0, %v574_v18  ;;  %v241_v25 = vsub.f32 0.0, %v585_v21  ;;  %v90_v32 = vld [vmem:[%s813_s1] sm:$0xff]  ;;  %v91_v33 = vld [vmem:[%s813_s1 + $0x8] sm:$0xff]  ;;  %v616_v34 = vld [vmem:[%s813_s1 + $0x10] sm:$0xff] }
   0x7   :  { %461 = vpow2.f32 %v246_v8  ;;  %v624_v37 = vld [vmem:[%s813_s1 + $0x18] sm:$0xff]  ;;  %v633_v41 = vld [vmem:[%s813_s1 + $0x20] sm:$0xff]  ;;  %v643_v48 = vld [vmem:[%s813_s1 + $0x28] sm:$0xff]  ;;  %vm103_vm0 = vweird.f32 %v90_v32  ;;  %v107_v54 = vand.u32 2147483647, %v90_v32  ;;  %v109_v55 = vand.u32 2147483648, %v90_v32 }
   0x8   :  { %463 = vpow2.f32 %v248_v12  ;;  %v254_v26 = vmul.f32 1.442695, %v240_v22  ;;  %v252_v27 = vmul.f32 1.442695, %v239_v24  ;;  %v256_v28 = vmul.f32 1.442695, %v241_v25 }
   0x9   :  { %465 = vpow2.f32 %v244_v13  ;;  %v649_v50 = vld [vmem:[%s813_s1 + $0x30] sm:$0xff]  ;;  %vm118_vm2 = vweird.f32 %v91_v33  ;;  %v124_v59 = vand.u32 2147483648, %v91_v33  ;;  %vm133_vm5 = vweird.f32 %v616_v34  ;;  %v671_v63 = vld [vmem:[%s813_s1 + $0x38] sm:$0xff]  ;;  %s519_s1 = smov [#allocation3]   ;;  %s433_s16 = sshll.u32 %s814_s2, 4  ;;  %s434_s16 = int_to_ptr.hbm [resolvable:$true] %s433_s16 }
   0xa   :  { %467 = vpow2.f32 %v250_v14  ;;  %v122_v62 = vand.u32 2147483647, %v91_v33  ;;  %v110_v3 = vor.u32 1.1754944e-38, %v109_v55  ;;  %v139_v4 = vand.u32 2147483648, %v616_v34  ;;  %s431_s13 = sshll.u32 %s519_s1, 4  ;;  %s432_s13 = int_to_ptr.vmem [resolvable:$true] %s431_s13 }
   0xb   :  { %469 = vpow2.f32 %v254_v26  ;;  %vm108_vm8 = vcmp.eq.f32.partialorder %v107_v54, 8.507059e+37  ;;  %v137_v10 = vand.u32 2147483647, %v616_v34  ;;  %v125_v14 = vor.u32 1.1754944e-38, %v124_v59 }
   0xc   :  { %v460_v15 = vpop.eup %459  ;;  %471 = vpow2.f32 %v252_v27  ;;  %vm123_vm10 = vcmp.eq.f32.partialorder %v122_v62, 8.507059e+37  ;;  %v140_v24 = vor.u32 1.1754944e-38, %v139_v4  ;;  %vm148_vm11 = vweird.f32 %v624_v37 }
   0xd   :  { %v462_v16 = vpop.eup %461  ;;  %266 = vrot.lane.b32.xlu0 %v460_v15, %s517_s15  ;;  %473 = vpow2.f32 %v256_v28  ;;  %vm138_vm12 = vcmp.eq.f32.partialorder %v137_v10, 8.507059e+37  ;;  %v154_v27 = vand.u32 2147483648, %v624_v37  ;;  %vm163_vm15 = vweird.f32 %v633_v41 }
   0xe   :  { %270 = vrot.lane.b32.xlu1 %v462_v16, %s517_s15  ;;  %v464_v17 = vpop.eup %463  ;;  %475 = vrcp.f32 %v90_v32  ;;  %v182_v62 = vand.u32 2147483647, %v643_v48  ;;  %v199_v4 = vand.u32 2147483648, %v649_v50  ;;  %v197_v10 = vand.u32 2147483647, %v649_v50 }
   0xf   :  { %v466_v20 = vpop.eup %465  ;;  %272 = vrot.lane.b32.xlu2 %v464_v17, %s517_s15  ;;  %477 = vrcp.f32 %v91_v33 }
  0x10   :  { %v468_v23 = vpop.eup %467  ;;  %479 = vrcp.f32 %v616_v34 }
  0x11   :  { %v470_v29 = vpop.eup %469  ;;  %481 = vrcp.f32 %v624_v37 }
  0x12   :  { %v472_v30 = vpop.eup %471  ;;  %483 = vrcp.f32 %v633_v41 }
  0x13   :  { %v474_v31 = vpop.eup %473  ;;  %485 = vrcp.f32 %v643_v48 }
  0x14   :  { %v476_v35 = vpop.eup %475  ;;  %487 = vrcp.f32 %v649_v50 }
  0x15   :  { %268 = vrot.lane.b32.xlu0 %v466_v20, %s517_s15  ;;  %v619_v36 = vpop.eup %477  ;;  %v99_v38 = vmul.f32 %v476_v35, %v90_v32  ;;  %vm104_vm1 = vweird.f32 %v476_v35  ;;  %489 = vrcp.f32 %v671_v63  ;;  %v152_v32 = vand.u32 2147483647, %v624_v37 }
  0x16   :  { %274 = vrot.lane.b32.xlu1 %v468_v23, %s517_s15  ;;  %v626_v39 = vpop.eup %479  ;;  %v114_v40 = vmul.f32 %v619_v36, %v91_v33  ;;  %vm119_vm3 = vweird.f32 %v619_v36  ;;  %vm659_vm4 = vmor %vm103_vm0, %vm104_vm1 }
  0x17   :  { %312 = vrot.lane.b32.xlu2 %v564_v6, %s517_s15  ;;  %v100_v42 = vsub.f32 1.0, %v99_v38  ;;  %v129_v43 = vmul.f32 %v626_v39, %v616_v34  ;;  %v638_v45 = vpop.eup %481  ;;  %vm134_vm6 = vweird.f32 %v626_v39  ;;  %vm674_vm7 = vmor %vm118_vm2, %vm119_vm3  ;;  %vm153_vm1 = vcmp.eq.f32.partialorder %v152_v32, 8.507059e+37 }
  0x18   :  { %v115_v44 = vsub.f32 1.0, %v114_v40  ;;  %v651_v51 = vpop.eup %483  ;;  %v144_v52 = vmul.f32 %v638_v45, %v624_v37  ;;  %vm686_vm9 = vmor %vm133_vm5, %vm134_vm6  ;;  %vm149_vm13 = vweird.f32 %v638_v45  ;;  %v169_v40 = vand.u32 2147483648, %v633_v41 }
  0x19   :  { %v101_v46 = vmul.f32 %v476_v35, %v100_v42  ;;  %v130_v47 = vsub.f32 1.0, %v129_v43  ;;  %v159_v60 = vmul.f32 %v651_v51, %v633_v41  ;;  %v682_v11 = vpop.eup %485  ;;  %vm719_vm14 = vmor %vm148_vm11, %vm149_vm13  ;;  %vm164_vm0 = vweird.f32 %v651_v51 }
  0x1a   :  { %v116_v49 = vmul.f32 %v619_v36, %v115_v44  ;;  %v145_v61 = vsub.f32 1.0, %v144_v52  ;;  %v691_v16 = vpop.eup %487  ;;  %v174_v26 = vmul.f32 %v682_v11, %v643_v48  ;;  %v155_v43 = vor.u32 1.1754944e-38, %v154_v27  ;;  %vm733_vm2 = vmor %vm163_vm15, %vm164_vm0 }
  0x1b   :  { %v102_v53 = vadd.f32 %v476_v35, %v101_v46  ;;  %v131_v56 = vmul.f32 %v626_v39, %v130_v47  ;;  %v160_v15 = vsub.f32 1.0, %v159_v60  ;;  %v712_v33 = vpop.eup %489  ;;  %vm80_vm3 = vcmask 130048  }
  0x1c   :  { %v117_v58 = vadd.f32 %v619_v36, %v116_v49  ;;  %v146_v17 = vmul.f32 %v638_v45, %v145_v61  ;;  %v175_v42 = vsub.f32 1.0, %v174_v26  ;;  %v170_v54 = vor.u32 1.1754944e-38, %v169_v40 }
  0x1d   :  { %310 = vrot.lane.b32.xlu0 %v543_v1, %s517_s15  ;;  %v106_v8 = vsel %vm659_vm4, %v476_v35, %v102_v53  ;;  %v132_v9 = vadd.f32 %v626_v39, %v131_v56  ;;  %vm178_vm5 = vweird.f32 %v643_v48  ;;  %vm179_vm6 = vweird.f32 %v682_v11 }
  0x1e   :  { %314 = vrot.lane.b32.xlu1 %v557_v5, %s517_s15  ;;  %v121_v20 = vsel %vm674_vm7, %v619_v36, %v117_v58  ;;  %v111_v23 = vsel %vm108_vm8, %v110_v3, %v106_v8  ;;  %v518_v58 = vmov 0.0   ;;  %vm193_vm7 = vweird.f32 %v649_v50 }
  0x1f   :  { %278 = vrot.lane.b32.xlu2 %v470_v29, %s517_s15  ;;  %v136_v25 = vsel %vm686_vm9, %v626_v39, %v132_v9  ;;  %v126_v28 = vsel %vm123_vm10, %v125_v14, %v121_v20  ;;  %v161_v29 = vmul.f32 %v651_v51, %v160_v15  ;;  %v112_v35 = vmul.f32 %v111_v23, %v538_v0  ;;  %vm758_vm9 = vmor %vm178_vm5, %vm179_vm6 }
  0x20   :  { %v141_v36 = vsel %vm138_vm12, %v140_v24, %v136_v25  ;;  %v127_v39 = vmul.f32 %v126_v28, %v548_v2  ;;  %v167_v0 = vand.u32 2147483647, %v633_v41  ;;  %v204_v2 = vmul.f32 %v712_v33, %v671_v63  ;;  %81 = vst.msk [vmem:[#allocation2] sm:$0xff] %vm80_vm3, %v518_v58 }
  0x21   :  { %v162_v44 = vadd.f32 %v651_v51, %v161_v29  ;;  %v142_v37 = vmul.f32 %v141_v36, %v543_v1  ;;  %v218_v52 = vsub.f32 1.0, %v112_v35  ;;  %v176_v1 = vmul.f32 %v682_v11, %v175_v42 }
  0x22   :  { %v219_v41 = vsub.f32 1.0, %v127_v39  ;;  %vm168_vm4 = vcmp.eq.f32.partialorder %v167_v0, 8.507059e+37  ;;  %v205_v60 = vsub.f32 1.0, %v204_v2  ;;  %vm194_vm8 = vweird.f32 %v691_v16 }
  0x23   :  { %v220_v59 = vsub.f32 1.0, %v142_v37  ;;  %v177_v7 = vadd.f32 %v682_v11, %v176_v1  ;;  %v226_v14 = vand.u32 2147483647, %v218_v52  ;;  %vm762_vm10 = vmor %vm193_vm7, %vm194_vm8  ;;  %vm768_vm11 = vcmp.eq.f32.partialorder %v182_v62, 8.507059e+37 }
  0x24   :  { %v227_v15 = vand.u32 2147483647, %v219_v41  ;;  %v200_v24 = vor.u32 1.1754944e-38, %v199_v4  ;;  %vm208_vm12 = vweird.f32 %v671_v63  ;;  %vm209_vm13 = vweird.f32 %v712_v33 }
  0x25   :  { %276 = vrot.lane.b32.xlu0 %v472_v30, %s517_s15  ;;  %v189_v30 = vmul.f32 %v691_v16, %v649_v50  ;;  %v228_v20 = vand.u32 2147483647, %v220_v59  ;;  %v181_v25 = vsel %vm758_vm9, %v682_v11, %v177_v7  ;;  %v214_v28 = vand.u32 2147483648, %v671_v63  ;;  %vm785_vm15 = vmor %vm208_vm12, %vm209_vm13 }
  0x26   :  { %280 = vrot.lane.b32.xlu1 %v474_v31, %s517_s15  ;;  %v147_v31 = vadd.f32 %v638_v45, %v146_v17 }
  0x27   :  { %318 = vrot.lane.b32.xlu2 %v579_v19, %s517_s15  ;;  %v190_v46 = vsub.f32 1.0, %v189_v30 }
  0x28   :  { %v151_v47 = vsel %vm719_vm14, %v638_v45, %v147_v31  ;;  %v166_v45 = vsel %vm733_vm2, %v651_v51, %v162_v44  ;;  %v184_v51 = vand.u32 2147483648, %v643_v48  ;;  %v206_v48 = vmul.f32 %v712_v33, %v205_v60 }
  0x29   :  { %v156_v56 = vsel %vm153_vm1, %v155_v43, %v151_v47  ;;  %v191_v57 = vmul.f32 %v691_v16, %v190_v46  ;;  %v171_v3 = vsel %vm168_vm4, %v170_v54, %v166_v45  ;;  %vm198_vm14 = vcmp.eq.f32.partialorder %v197_v10, 8.507059e+37 }
  0x2a   :  { %v157_v8 = vmul.f32 %v156_v56, %v564_v6  ;;  %v172_v23 = vmul.f32 %v171_v3, %v557_v5  ;;  %v185_v50 = vor.u32 1.1754944e-38, %v184_v51  ;;  %v207_v30 = vadd.f32 %v712_v33, %v206_v48 }
  0x2b   :  { %v192_v9 = vadd.f32 %v691_v16, %v191_v57  ;;  %v212_v31 = vand.u32 2147483647, %v671_v63  ;;  %v215_v43 = vor.u32 1.1754944e-38, %v214_v28 }
  0x2c   :  { %v221_v26 = vsub.f32 1.0, %v157_v8  ;;  %v186_v35 = vsel %vm768_vm11, %v185_v50, %v181_v25  ;;  %v222_v39 = vsub.f32 1.0, %v172_v23  ;;  %v211_v0 = vsel %vm785_vm15, %v712_v33, %v207_v30 }
  0x2d   :  { %316 = vrot.lane.b32.xlu0 %v574_v18, %s517_s15  ;;  %v196_v5 = vsel %vm762_vm10, %v691_v16, %v192_v9  ;;  %v187_v63 = vmul.f32 %v186_v35, %v574_v18  ;;  %vm213_vm0 = vcmp.eq.f32.partialorder %v212_v31, 8.507059e+37 }
  0x2e   :  { %v201_v40 = vsel %vm198_vm14, %v200_v24, %v196_v5  ;;  %v229_v42 = vand.u32 2147483647, %v221_v26  ;;  %v230_v47 = vand.u32 2147483647, %v222_v39  ;;  %v216_v49 = vsel %vm213_vm0, %v215_v43, %v211_v0  ;;  %v390_v24 = vld [vmem:[#allocation2] sm:$0xff] }
  0x2f   :  { %v202_v46 = vmul.f32 %v201_v40, %v579_v19  ;;  %v223_v41 = vsub.f32 1.0, %v187_v63  ;;  %v217_v19 = vmul.f32 %v216_v49, %v585_v21 }
  0x31   :  { %v231_v57 = vand.u32 2147483647, %v223_v41  ;;  %v225_v60 = vsub.f32 1.0, %v217_v19 }
  0x33   :  { %v233_v9 = vand.u32 2147483647, %v225_v60 }
  0x35   :  { %320 = vrot.lane.b32.xlu0 %v585_v21, %s517_s15 }
  0x5c   :  { %v684_v12 = vpop.permute.xlu2 %308 }
  0x69   :  { %v739_v53 = vpop.permute.xlu2 %272 }
  0x6a   :  { %v293_v2 = vmul.f32 %v739_v53, %v229_v42 }
  0x71   :  { %v313_v27 = vpop.permute.xlu2 %312 }
  0x72   :  { %v333_v45 = vadd.f32 %v313_v27, %v293_v2 }
  0x74   :  { %v697_v22 = vpop.permute.xlu1 %306 }
  0x79   :  { %v279_v54 = vpop.permute.xlu2 %278 }
  0x7f   :  { %v714_v34 = vpop.permute.xlu0 %266 }
  0x80   :  { %v271_v55 = vpop.permute.xlu1 %270  ;;  %v290_v38 = vmul.f32 %v714_v34, %v226_v14 }
  0x81   :  { %v292_v16 = vmul.f32 %v271_v55, %v228_v20  ;;  %v319_v10 = vpop.permute.xlu2 %318 }
  0x82   :  { %v330_v37 = vadd.f32 %v697_v22, %v290_v38 }
  0x84   :  { %v392_v1 = vsel %vm80_vm3, %v330_v37, 0.0 }
  0x87   :  { %v269_v61 = vpop.permute.xlu0 %268 }
  0x88   :  { %v291_v29 = vmul.f32 %v269_v61, %v227_v15  ;;  %v275_v32 = vpop.permute.xlu1 %274  ;;  %v397_v61 = vsel %vm80_vm3, %v333_v45, 0.0 }
  0x89   :  { %v294_v55 = vmul.f32 %v275_v32, %v230_v47 }
  0x8a   :  { %v331_v44 = vadd.f32 %v684_v12, %v291_v29  ;;  %v224_v12 = vsub.f32 1.0, %v202_v46 }
  0x8c   :  { %v393_v52 = vsel %vm80_vm3, %v331_v44, 0.0  ;;  %v232_v53 = vand.u32 2147483647, %v224_v12 }
  0x8d   :  { %v394_v56 = vadd.f32 %v393_v52, %v392_v1 }
  0x8e   :  { %v296_v7 = vmul.f32 %v279_v54, %v232_v53 }
  0x8f   :  { %v311_v11 = vpop.permute.xlu0 %310 }
  0x90   :  { %v332_v34 = vadd.f32 %v311_v11, %v292_v16  ;;  %v315_v22 = vpop.permute.xlu1 %314  ;;  %v336_v15 = vadd.f32 %v319_v10, %v296_v7 }
  0x91   :  { %v334_v59 = vadd.f32 %v315_v22, %v294_v55 }
  0x92   :  { %v395_v33 = vsel %vm80_vm3, %v332_v34, 0.0  ;;  %v403_v23 = vsel %vm80_vm3, %v336_v15, 0.0 }
  0x93   :  { %v396_v58 = vadd.f32 %v395_v33, %v394_v56  ;;  %v399_v4 = vsel %vm80_vm3, %v334_v59, 0.0 }
  0x95   :  { %v398_v51 = vadd.f32 %v397_v61, %v396_v58 }
  0x97   :  { %v277_v18 = vpop.permute.xlu0 %276  ;;  %v400_v14 = vadd.f32 %v399_v4, %v398_v51 }
  0x98   :  { %v295_v62 = vmul.f32 %v277_v18, %v231_v57  ;;  %v281_v21 = vpop.permute.xlu1 %280 }
  0x99   :  { %v297_v17 = vmul.f32 %v281_v21, %v233_v9 }
  0x9f   :  { %v317_v3 = vpop.permute.xlu0 %316 }
  0xa0   :  { %v335_v8 = vadd.f32 %v317_v3, %v295_v62 }
  0xa2   :  { %v401_v13 = vsel %vm80_vm3, %v335_v8, 0.0 }
  0xa3   :  { %v402_v48 = vadd.f32 %v401_v13, %v400_v14 }
  0xa5   :  { %v404_v50 = vadd.f32 %v403_v23, %v402_v48 }
  0xa7   :  { %v321_v20 = vpop.permute.xlu0 %320 }
  0xa8   :  { %v337_v6 = vadd.f32 %v321_v20, %v297_v17 }
  0xaa   :  { %v405_v25 = vsel %vm80_vm3, %v337_v6, 0.0 }
  0xab   :  { %v406_v26 = vadd.f32 %v405_v25, %v404_v50 }
  0xad   :  { %v407_v27 = vadd.f32 %v406_v26, %v390_v24 }
  0xaf   :  { %408 = vst.msk [vmem:[#allocation2] sm:$0xff] %vm80_vm3, %v407_v27 }
  0xb6   :  { %v412_v5 = vld [vmem:[#allocation2] sm:$0xff] }
  0xb7   :  { %v413_v28 = vsel %vm80_vm3, %v412_v5, 0.0 }
  0xb8   :  { %414 = vadd.xlane.f32.xlu1 %v413_v28 }
 0x12b   :  { %v415_v29 = vpop.xlane.xlu1 %414 }
 0x12c   :  { %v416_v30 = vrot.slane %v415_v29, 4 }
 0x12e   :  { %v417_v31 = vadd.f32 %v416_v30, %v415_v29 }
 0x130   :  { %v418_v32 = vrot.slane %v417_v31, 2 }
 0x132   :  { %v419_v11 = vadd.f32 %v418_v32, %v417_v31 }
 0x134   :  { %v420_v35 = vrot.slane %v419_v11, 1 }
 0x136   :  { %v421_v36 = vadd.f32 %v420_v35, %v419_v11 }
 0x138   :  { %454 = vpush %v421_v36 }
 0x169   :  { %s455_s17 = spop %454 }
 0x16a   :  { %v423_v38 = vstv %s455_s17 }
 0x16b   :  { %425 = vst [vmem:[#allocation3] sm:$0xff] %v423_v38 }
 0x16c   :  { %436 = dma.vmem_to_hbm [thread:$0]  %s432_s13, 128, %s434_s16, [#allocation4]  }
 0x16d   :  { %515 = dma.done.wait [#allocation4], 128  }
 0x16e   :  { %516 = vsyncadd [#allocation4], 4294967168 }
 0x16f   :  { %441 = vsyncpa [#allocation4], 1 }

</bundles_post_ra>
